<compile_context>
chip_gen: v7x
topology: tpu7x:2x2x1
jax: 0.10.0
libtpu: 0.0.40
codegen_flags: <defaults>
</compile_context>

<pallas_src>
import functools

import jax
import jax.numpy as jnp
from jax.experimental import pallas as pl
from jax.experimental.pallas import tpu as pltpu

LANE = 128
MAX_TILE_ROWS = 2048   # 2048*128*4B = 1 MiB per input block; 2 in * 2 bufs = 4 MiB VMEM


def _cdiv(a, b):
    return -(-a // b)


def _round_up(a, b):
    return _cdiv(a, b) * b


def _make_dice_kernel(tile_rows, valid_per_sample, needs_mask):
    """Kernel producing masked per-lane partial sums for one batch element.

    out rows: 0 = sum(sigmoid(x) * t)   (intersection)
              1 = sum(sigmoid(x))
              2 = sum(t)
    """

    def kernel(x_ref, t_ref, out_ref):
        step = pl.program_id(1)

        @pl.when(step == 0)
        def _():
            out_ref[...] = jnp.zeros_like(out_ref)

        x = x_ref[...]                # (tile_rows, LANE) f32
        t = t_ref[...]
        s = jax.nn.sigmoid(x)

        if needs_mask:
            # Rebuild the validity mask from the grid index instead of streaming
            # a third tensor from HBM (padded logits give sigmoid(0)=0.5, so the
            # padded tail must be excluded from sum_p).
            row_ids = jax.lax.broadcasted_iota(jnp.int32, (tile_rows, LANE), 0)
            lane_ids = jax.lax.broadcasted_iota(jnp.int32, (tile_rows, LANE), 1)
            gidx = (step * tile_rows + row_ids) * LANE + lane_ids
            m = (gidx < valid_per_sample).astype(jnp.float32)
            s = s * m
            t = t * m

        out_ref[0:1, :] += jnp.sum(s * t, axis=0, keepdims=True)
        out_ref[1:2, :] += jnp.sum(s, axis=0, keepdims=True)
        out_ref[2:3, :] += jnp.sum(t, axis=0, keepdims=True)

    return kernel


def _dice_partial_sums(x3d, t3d, tile_rows, valid_per_sample, needs_mask):
    n, padded_rows, _ = x3d.shape
    grid = (n, padded_rows // tile_rows)
    in_spec = pl.BlockSpec((None, tile_rows, LANE), lambda b, i: (b, i, 0))
    out_spec = pl.BlockSpec((None, 8, LANE), lambda b, i: (b, 0, 0))
    return pl.pallas_call(
        _make_dice_kernel(tile_rows, valid_per_sample, needs_mask),
        out_shape=jax.ShapeDtypeStruct((n, 8, LANE), jnp.float32),
        grid_spec=pltpu.PrefetchScalarGridSpec(
            num_scalar_prefetch=0,
            grid=grid,
            in_specs=[in_spec, in_spec],
            out_specs=out_spec,
        ),
        compiler_params=pltpu.CompilerParams(
            dimension_semantics=("parallel", "arbitrary"),
        ),
    )(x3d, t3d)


@jax.jit
def dice_loss(inputs, targets, smooth=1.0):
    """Pallas-backed equivalent of DiceLoss.forward(inputs, targets, smooth)."""
    x = inputs.astype(jnp.float32)
    t = targets.astype(jnp.float32)
    n = x.shape[0]
    per_sample = 1
    for d in x.shape[1:]:
        per_sample *= d

    # Per-sample lane-major layout: (N, rows, 128). Tile rows so that each block
    # is as large as possible (<= MAX_TILE_ROWS) while keeping padding < 8 rows
    # per tile.  Typical C*H*W sizes are already multiples of 128, so the pad
    # copy below is usually skipped entirely.
    rows = _cdiv(per_sample, LANE)
    num_tiles = _cdiv(rows, MAX_TILE_ROWS)
    tile_rows = _round_up(_cdiv(rows, num_tiles), 8)
    padded_rows = num_tiles * tile_rows
    padded = padded_rows * LANE
    pad = padded - per_sample

    x2 = x.reshape(n, per_sample)
    t2 = t.reshape(n, per_sample)
    if pad:
        x2 = jnp.pad(x2, ((0, 0), (0, pad)))
        t2 = jnp.pad(t2, ((0, 0), (0, pad)))
    x3 = x2.reshape(n, padded_rows, LANE)
    t3 = t2.reshape(n, padded_rows, LANE)

    slab = _dice_partial_sums(x3, t3, tile_rows, per_sample, pad > 0)

    inter = jnp.sum(slab[:, 0, :], axis=-1)   # (N,)
    sum_p = jnp.sum(slab[:, 1, :], axis=-1)
    sum_t = jnp.sum(slab[:, 2, :], axis=-1)

    smooth = jnp.float32(smooth)
    dice = (2.0 * inter + smooth) / (sum_p + sum_t + smooth)
    return jnp.mean(1.0 - dice)


def _ref_dice_loss(inputs, targets, smooth=1.0):
    """Pure-JAX reference matching the PyTorch DiceLoss semantics."""
    x = jax.nn.sigmoid(inputs.astype(jnp.float32))
    t = targets.astype(jnp.float32)
    n = x.shape[0]
    x = x.reshape(n, -1)
    t = t.reshape(n, -1)
    inter = jnp.sum(x * t, axis=1)
    dice = (2.0 * inter + smooth) / (jnp.sum(x, axis=1) + jnp.sum(t, axis=1) + smooth)
    return jnp.mean(1.0 - dice)


if __name__ == "__main__":
    key = jax.random.PRNGKey(0)
    k1, k2, k3, k4 = jax.random.split(key, 4)

    # batch=2, channels=1, spatial=16 (binary-mask dice, NCHW)
    logits = jax.random.normal(k1, (2, 1, 16, 16), dtype=jnp.float32)
    targets = (jax.random.uniform(k2, (2, 1, 16, 16)) > 0.5).astype(jnp.float32)
    loss = jax.block_until_ready(dice_loss(logits, targets))
    ref = _ref_dice_loss(logits, targets)
    assert jnp.allclose(loss, ref, rtol=1e-5, atol=1e-5), (loss, ref)

    # second case: per-sample size not a multiple of 128 (exercises in-kernel mask)
    logits2 = jax.random.normal(k3, (3, 3, 10, 10), dtype=jnp.float32)
    targets2 = (jax.random.uniform(k4, (3, 3, 10, 10)) > 0.5).astype(jnp.float32)
    loss2 = jax.block_until_ready(dice_loss(logits2, targets2))
    ref2 = _ref_dice_loss(logits2, targets2)
    assert jnp.allclose(loss2, ref2, rtol=1e-5, atol=1e-5), (loss2, ref2)

    print("KERNEL_OK")
</pallas_src>

<mosaic_0001>
module attributes {stable_mosaic.version = 11 : i64} {
  func.func @kernel(%arg0: i32, %arg1: i32, %arg2: memref<1x8x128xf32, #tpu.memory_space<vmem>>, %arg3: memref<1x8x128xf32, #tpu.memory_space<vmem>>, %arg4: memref<1x8x128xf32, #tpu.memory_space<vmem>>) attributes {dimension_semantics = [#tpu.dimension_semantics<parallel>, #tpu.dimension_semantics<arbitrary>], iteration_bounds = array<i64: 2, 1>, scalar_prefetch = 0 : i64, scratch_operands = 0 : i64, tpu.core_type = #tpu.core_type<tc>, window_params = [{transform_indices = @transform_0, window_bounds = array<i64: 1, 8, 128>}, {transform_indices = @transform_1, window_bounds = array<i64: 1, 8, 128>}, {transform_indices = @transform_2, window_bounds = array<i64: 1, 8, 128>}]} {
    %c0_i32 = arith.constant 0 : i32
    %0 = arith.cmpi eq, %arg1, %c0_i32 : i32
    %1 = arith.extui %0 : i1 to i32
    %c0_i32_0 = arith.constant 0 : i32
    %2 = arith.cmpi ne, %1, %c0_i32_0 : i32
    scf.if %2 {
      %cst_25 = arith.constant 0.000000e+00 : f32
      %51 = vector.broadcast %cst_25 : f32 to vector<8x128xf32>
      %c0_26 = arith.constant 0 : index
      %c0_27 = arith.constant 0 : index
      %c0_28 = arith.constant 0 : index
      %52 = vector.load %arg4[%c0_26, %c0_27, %c0_28] : memref<1x8x128xf32, #tpu.memory_space<vmem>>, vector<1x8x128xf32>
      %53 = vector.shape_cast %52 : vector<1x8x128xf32> to vector<8x128xf32>
      %54 = vector.shape_cast %51 : vector<8x128xf32> to vector<1x8x128xf32>
      tpu.vector_store %arg4[%c0_26, %c0_27, %c0_28], %54 {strides = array<i32>} : memref<1x8x128xf32, #tpu.memory_space<vmem>>, vector<1x8x128xf32>,
    } else {
    }
    %c0 = arith.constant 0 : index
    %c0_1 = arith.constant 0 : index
    %c0_2 = arith.constant 0 : index
    %3 = vector.load %arg2[%c0, %c0_1, %c0_2] : memref<1x8x128xf32, #tpu.memory_space<vmem>>, vector<1x8x128xf32>
    %4 = vector.shape_cast %3 : vector<1x8x128xf32> to vector<8x128xf32>
    %c0_3 = arith.constant 0 : index
    %c0_4 = arith.constant 0 : index
    %c0_5 = arith.constant 0 : index
    %5 = vector.load %arg3[%c0_3, %c0_4, %c0_5] : memref<1x8x128xf32, #tpu.memory_space<vmem>>, vector<1x8x128xf32>
    %6 = vector.shape_cast %5 : vector<1x8x128xf32> to vector<8x128xf32>
    %7 = arith.negf %4 : vector<8x128xf32>
    %8 = math.exp %7 : vector<8x128xf32>
    %cst = arith.constant 1.000000e+00 : f32
    %9 = vector.broadcast %cst : f32 to vector<8x128xf32>
    %10 = arith.addf %9, %8 : vector<8x128xf32>
    %11 = arith.divf %9, %10 : vector<8x128xf32>
    %12 = tpu.iota {dimensions = array<i32: 0>} : vector<8x128xi32>
    %13 = tpu.iota {dimensions = array<i32: 1>} : vector<8x128xi32>
    %c8_i32 = arith.constant 8 : i32
    %14 = arith.muli %arg1, %c8_i32 : i32
    %15 = vector.broadcast %14 : i32 to vector<8x128xi32>
    %16 = arith.addi %15, %12 : vector<8x128xi32>
    %c128_i32 = arith.constant 128 : i32
    %17 = vector.broadcast %c128_i32 : i32 to vector<8x128xi32>
    %18 = arith.muli %16, %17 : vector<8x128xi32>
    %19 = arith.addi %18, %13 : vector<8x128xi32>
    %c256_i32 = arith.constant 256 : i32
    %20 = vector.broadcast %c256_i32 : i32 to vector<8x128xi32>
    %21 = arith.cmpi slt, %19, %20 : vector<8x128xi32>
    %22 = arith.extui %21 : vector<8x128xi1> to vector<8x128xi32>
    %23 = arith.sitofp %22 : vector<8x128xi32> to vector<8x128xf32>
    %24 = arith.mulf %11, %23 : vector<8x128xf32>
    %25 = arith.mulf %6, %23 : vector<8x128xf32>
    %c0_6 = arith.constant 0 : index
    %c0_7 = arith.constant 0 : index
    %c0_8 = arith.constant 0 : index
    %26 = vector.load %arg4[%c0_6, %c0_7, %c0_8] : memref<1x8x128xf32, #tpu.memory_space<vmem>>, vector<1x1x128xf32>
    %27 = vector.shape_cast %26 : vector<1x1x128xf32> to vector<1x128xf32>
    %28 = arith.mulf %24, %25 : vector<8x128xf32>
    %cst_9 = arith.constant dense<0.000000e+00> : vector<128xf32>
    %29 = vector.multi_reduction <add>, %28, %cst_9 [0] : vector<8x128xf32> to vector<128xf32>
    %30 = vector.shape_cast %29 : vector<128xf32> to vector<1x128xf32>
    %31 = arith.addf %27, %30 : vector<1x128xf32>
    %c0_10 = arith.constant 0 : index
    %c0_11 = arith.constant 0 : index
    %c0_12 = arith.constant 0 : index
    %32 = vector.load %arg4[%c0_10, %c0_11, %c0_12] : memref<1x8x128xf32, #tpu.memory_space<vmem>>, vector<1x1x128xf32>
    %33 = vector.shape_cast %32 : vector<1x1x128xf32> to vector<1x128xf32>
    %34 = vector.shape_cast %31 : vector<1x128xf32> to vector<1x1x128xf32>
    tpu.vector_store %arg4[%c0_10, %c0_11, %c0_12], %34 {strides = array<i32>} : memref<1x8x128xf32, #tpu.memory_space<vmem>>, vector<1x1x128xf32>,
    %c0_13 = arith.constant 0 : index
    %c1 = arith.constant 1 : index
    %c0_14 = arith.constant 0 : index
    %35 = vector.load %arg4[%c0_13, %c1, %c0_14] : memref<1x8x128xf32, #tpu.memory_space<vmem>>, vector<1x1x128xf32>
    %36 = vector.shape_cast %35 : vector<1x1x128xf32> to vector<1x128xf32>
    %cst_15 = arith.constant dense<0.000000e+00> : vector<128xf32>
    %37 = vector.multi_reduction <add>, %24, %cst_15 [0] : vector<8x128xf32> to vector<128xf32>
    %38 = vector.shape_cast %37 : vector<128xf32> to vector<1x128xf32>
    %39 = arith.addf %36, %38 : vector<1x128xf32>
    %c0_16 = arith.constant 0 : index
    %c1_17 = arith.constant 1 : index
    %c0_18 = arith.constant 0 : index
    %40 = vector.load %arg4[%c0_16, %c1_17, %c0_18] : memref<1x8x128xf32, #tpu.memory_space<vmem>>, vector<1x1x128xf32>
    %41 = vector.shape_cast %40 : vector<1x1x128xf32> to vector<1x128xf32>
    %42 = vector.shape_cast %39 : vector<1x128xf32> to vector<1x1x128xf32>
    tpu.vector_store %arg4[%c0_16, %c1_17, %c0_18], %42 {strides = array<i32>} : memref<1x8x128xf32, #tpu.memory_space<vmem>>, vector<1x1x128xf32>,
    %c0_19 = arith.constant 0 : index
    %c2 = arith.constant 2 : index
    %c0_20 = arith.constant 0 : index
    %43 = vector.load %arg4[%c0_19, %c2, %c0_20] : memref<1x8x128xf32, #tpu.memory_space<vmem>>, vector<1x1x128xf32>
    %44 = vector.shape_cast %43 : vector<1x1x128xf32> to vector<1x128xf32>
    %cst_21 = arith.constant dense<0.000000e+00> : vector<128xf32>
    %45 = vector.multi_reduction <add>, %25, %cst_21 [0] : vector<8x128xf32> to vector<128xf32>
    %46 = vector.shape_cast %45 : vector<128xf32> to vector<1x128xf32>
    %47 = arith.addf %44, %46 : vector<1x128xf32>
    %c0_22 = arith.constant 0 : index
    %c2_23 = arith.constant 2 : index
    %c0_24 = arith.constant 0 : index
    %48 = vector.load %arg4[%c0_22, %c2_23, %c0_24] : memref<1x8x128xf32, #tpu.memory_space<vmem>>, vector<1x1x128xf32>
    %49 = vector.shape_cast %48 : vector<1x1x128xf32> to vector<1x128xf32>
    %50 = vector.shape_cast %47 : vector<1x128xf32> to vector<1x1x128xf32>
    tpu.vector_store %arg4[%c0_22, %c2_23, %c0_24], %50 {strides = array<i32>} : memref<1x8x128xf32, #tpu.memory_space<vmem>>, vector<1x1x128xf32>,
    return
  }
  func.func @transform_0(%arg0: i32, %arg1: i32) -> (i32, i32, i32) {
    %c0_i32 = arith.constant 0 : i32
    %c0_i32_0 = arith.constant 0 : i32
    return %arg0, %arg1, %c0_i32 : i32, i32, i32
  }
  func.func @transform_1(%arg0: i32, %arg1: i32) -> (i32, i32, i32) {
    %c0_i32 = arith.constant 0 : i32
    %c0_i32_0 = arith.constant 0 : i32
    return %arg0, %arg1, %c0_i32 : i32, i32, i32
  }
  func.func @transform_2(%arg0: i32, %arg1: i32) -> (i32, i32, i32) {
    %c0_i32 = arith.constant 0 : i32
    %c0_i32_0 = arith.constant 0 : i32
    %c0_i32_1 = arith.constant 0 : i32
    return %arg0, %c0_i32, %c0_i32_0 : i32, i32, i32
  }
}

</mosaic_0001>

<bundles_post_ra>
// kernel: dice_loss.1
= control target key start
LH: loop header
LB: loop body
LE: loop exit
PB: predicated region body
PF: predicated region fallthrough
CT: control target
= control target key end

     0   :  { %s405_s9 = smov 0   ;;  %s407_s10 = smov 0   ;;  %s450_s0 = inlined_call_operand.vmem [shape: f32[2,8,128], index: 0, kind: input, shape index: {}]   ;;  %s451_s1 = inlined_call_operand.vmem [shape: f32[2,8,128], index: 1, kind: input, shape index: {}]   ;;  %s452_s2 = inlined_call_operand.vmem [shape: f32[2,8,128], index: 2, kind: output, shape index: {}]  }
   0x1   :  { %s409_s11 = smov 0  }
   0x2 LB: > { %s24_s12 = sadd.s32 1, %s383_s10  ;;  %p328_p0 = scmp.ge.s32.totalorder %s387_s11, 1  ;;  %s387_s11 = sphi %s409_s11, %s12_s11   ;;  %s383_s10 = sphi %s407_s10, %s454_s10   ;;  %s379_s9 = sphi %s405_s9, %s453_s9  }
   0x3   : > { %p26_p1 = scmp.ge.s32.totalorder %s24_s12, 2  ;;  %p142_p2 = scmp.lt.s32.totalorder %s387_s11, 3 }
   0x5   : > { %s456_s12 = smov (%p26_p1, %s24_s12), 0  ;;  %p143_p3 = pnand %p328_p0, %p142_p2 }
   0x6   : > { %p172_p4 = scmp.lt.s32.totalorder (!%p143_p3), %s379_s9, 1  ;;  %v203_v0 = vlaneseq (!%p143_p3)  ;;  %v389_v6 = vmov (!%p143_p3), 0.0  }
   0x7   : > { %146 = sbr.rel (%p143_p3) target bundleno = 63 (0x3f), region = 28 }
   0x8   : > { %v204_v1 = vshrl.u32 (!%p143_p3), %v203_v0, 7  ;;  %v206_v2 = vand.u32 (!%p143_p3), 127, %v203_v0 }
   0xa   : > { %v210_v3 = vmul.u32 (!%p143_p3), 128, %v204_v1 }
   0xc   : > { %v211_v5 = vadd.s32 (!%p143_p3), %v210_v3, %v206_v2 }
   0xe   : > { %s458_s9 = smov (!%p172_p4, %s379_s9), 1  ;;  %vm212_vm0 = vcmp.lt.s32.totalorder %v211_v5, 256 }
   0xf   : > { %s329_s13 = sshll.u32 %s458_s9, 3  ;;  %v333_v9 = vsel %vm212_vm0, 1.0, %v389_v6 }
  0x10   : > { %s178_s16 = scalar_lea.vmem %s450_s0, %s329_s13  ;;  %s185_s19 = scalar_lea.vmem %s451_s1, %s329_s13 }
  0x11   : > { %s432_s22 = scalar_lea.vmem %s452_s2, %s329_s13  ;;  %v195_v4 = vld [vmem:[%s178_s16] sm:$0xff] }
  0x12   : > { %194 = vst [vmem:[%s432_s22] sm:$0xff] %v389_v6  ;;  %v196_v7 = vld [vmem:[%s185_s19] sm:$0xff]  ;;  %v332_v8 = vmul.f32 -1.442695, %v195_v4 }
  0x13   : > { %v216_v10 = vmul.f32 %v333_v9, %v196_v7 }
  0x14   : > { %361 = vpow2.f32 %v332_v8 }
  0x15   : > { %v237_v11 = vrot.slane %v216_v10, 4 }
  0x17   : > { %v238_v12 = vadd.f32 %v237_v11, %v216_v10 }
  0x19   : > { %v239_v13 = vrot.slane %v238_v12, 2  ;;  %v236_v18 = vld [vmem:[%s432_s22 + $0x2] sm:$0x1]  ;;  %v227_v33 = vld [vmem:[%s432_s22 + $0x1] sm:$0x1] }
  0x1a   : > { %v217_v36 = vld [vmem:[%s432_s22] sm:$0x1] }
  0x1b   : > { %v240_v14 = vadd.f32 %v239_v13, %v238_v12 }
  0x1d   : > { %v241_v17 = vrot.slane %v240_v14, 1 }
  0x1e   : > { %v362_v15 = vpop.eup %361 }
  0x1f   : > { %v200_v16 = vadd.f32 1.0, %v362_v15  ;;  %v242_v19 = vadd.f32 %v241_v17, %v240_v14 }
  0x21   : > { %363 = vrcp.f32 %v200_v16  ;;  %v243_v20 = vadd.f32 %v242_v19, %v236_v18 }
  0x23   : > { %244 = vst [vmem:[%s432_s22 + $0x2] sm:$0x1] %v243_v20 }
  0x2b   : > { %v364_v21 = vpop.eup %363 }
  0x2c   : > { %v215_v22 = vmul.f32 %v364_v21, %v333_v9 }
  0x2e   : > { %v218_v23 = vmul.f32 %v216_v10, %v215_v22  ;;  %v228_v24 = vrot.slane %v215_v22, 4 }
  0x30   : > { %v219_v25 = vrot.slane %v218_v23, 4  ;;  %v229_v26 = vadd.f32 %v228_v24, %v215_v22 }
  0x32   : > { %v220_v27 = vadd.f32 %v219_v25, %v218_v23  ;;  %v230_v28 = vrot.slane %v229_v26, 2 }
  0x34   : > { %v221_v29 = vrot.slane %v220_v27, 2  ;;  %v231_v30 = vadd.f32 %v230_v28, %v229_v26 }
  0x36   : > { %v222_v31 = vadd.f32 %v221_v29, %v220_v27  ;;  %v232_v32 = vrot.slane %v231_v30, 1 }
  0x38   : > { %v223_v34 = vrot.slane %v222_v31, 1  ;;  %v233_v35 = vadd.f32 %v232_v32, %v231_v30 }
  0x3a   : > { %v224_v37 = vadd.f32 %v223_v34, %v222_v31  ;;  %v234_v38 = vadd.f32 %v233_v35, %v227_v33 }
  0x3c   : > { %v225_v39 = vadd.f32 %v224_v37, %v217_v36  ;;  %235 = vst [vmem:[%s432_s22 + $0x1] sm:$0x1] %v234_v38 }
  0x3e   : > { %226 = vst [vmem:[%s432_s22] sm:$0x1] %v225_v39 }
  0x3f PF: > { %s12_s11 = sadd.s32 1, %s387_s11   ;;  %s453_s9 = smov %s383_s10 }
  0x40   : > { %p9_p5 = scmp.ge.s32.totalorder %s12_s11, 4   ;;  %s454_s10 = smov %s456_s12 }
  0x42   :  { %11 = sbr.rel (!%p9_p5) target bundleno = 2 (0x2), region = 65 }

</bundles_post_ra>
